<compile_context>
chip_gen: v5e
topology: v5e:2x2
jax: 0.10.0
libtpu: 0.0.40
codegen_flags: <defaults>
</compile_context>

<pallas_src>
import jax
import jax.numpy as jnp
from jax.experimental import pallas as pl
from jax.experimental.pallas import tpu as pltpu

_LANE = 128
_SUBLANE = 8
_MIN_SPLIT_BATCH = 512  # below this, don't split the batch just for megacore


def _round_up(n, m):
    return (n + m - 1) // m * m


def _cdiv(a, b):
    return -(-a // b)


def _pad2d(a, rows, cols):
    pr, pc = rows - a.shape[0], cols - a.shape[1]
    if pr == 0 and pc == 0:
        return a
    return jnp.pad(a, ((0, pr), (0, pc)))


def generator_kernel(x_ref, w1_ref, b1_ref, w2_ref, b2_ref, w3_ref, b3_ref,
                     out_ref):
    # Load weights / biases once per grid step (constant index_maps keep them
    # VMEM-resident; no re-broadcast per add).
    x = x_ref[...]
    w1 = w1_ref[...]
    w2 = w2_ref[...]
    w3 = w3_ref[...]
    b1 = b1_ref[...]
    b2 = b2_ref[...]
    b3 = b3_ref[...]
    cd = w2.dtype  # MXU operand (compute) dtype, e.g. bf16

    # fc1 + ReLU  (f32 accumulation on the MXU, f32 bias add)
    h = jnp.dot(x, w1, preferred_element_type=jnp.float32) + b1
    h = jnp.maximum(h, 0.0)

    # fc2 + ReLU, applied twice (exactly as in the PyTorch forward)
    h = jnp.dot(h.astype(cd), w2, preferred_element_type=jnp.float32) + b2
    h = jnp.maximum(h, 0.0)
    h = jnp.dot(h.astype(cd), w2, preferred_element_type=jnp.float32) + b2
    h = jnp.maximum(h, 0.0)

    # fc3 + tanh  (unpadded N = out_size; masked vst is fine — store slot has
    # huge slack in this mem-bound kernel)
    y = jnp.dot(h.astype(cd), w3, preferred_element_type=jnp.float32) + b3
    out_ref[...] = jnp.tanh(y).astype(out_ref.dtype)


def _choose_batch_tile(B, block_b):
    """Pick (tb, b_p, grid) minimizing padding waste and keeping >=2 steps
    for megacore when the batch is large enough to be worth splitting."""
    num_tiles = max(_cdiv(B, block_b), 1)
    if num_tiles < 2 and B >= _MIN_SPLIT_BATCH:
        num_tiles = 2  # engage the 2nd TensorCore on v7x via "parallel" axis
    tb = max(_round_up(_cdiv(B, num_tiles), _SUBLANE), _SUBLANE)
    b_p = _round_up(B, tb)
    return tb, b_p, (b_p // tb,)


def generator_forward(x, params, *, block_b=4096, compute_dtype=jnp.bfloat16):
    """x: [B, input_size] f32. Returns [B, output_size] f32."""
    w1, b1 = params["w1"], params["b1"]
    w2, b2 = params["w2"], params["b2"]
    w3, b3 = params["w3"], params["b3"]

    B, in_size = x.shape
    hid = w1.shape[1]
    out_size = w3.shape[1]

    # Lane-dense zero-padding of the *hidden* dim only (output stays unpadded).
    hid_p = _round_up(hid, _LANE)

    w1p = _pad2d(w1, in_size, hid_p).astype(compute_dtype)
    w2p = _pad2d(w2, hid_p, hid_p).astype(compute_dtype)
    w3p = _pad2d(w3, hid_p, out_size).astype(compute_dtype)
    b1p = _pad2d(b1, 1, hid_p)   # biases stay f32 (added to the f32 accumulator)
    b2p = _pad2d(b2, 1, hid_p)
    b3p = b3                     # (1, out_size), unpadded

    # Batch is a real grid axis; pad to a whole number of batch tiles.
    tb, b_p, grid = _choose_batch_tile(B, block_b)
    # NOTE: in_size is intentionally not lane-padded (K=64 matmul is legal and
    # padding would double the x HBM read for zero benefit).
    xp = _pad2d(x, b_p, in_size).astype(compute_dtype)

    # Constant (weight/bias) specs: constant index_map -> fetched once, stays
    # VMEM-resident across the batch grid.
    # TODO(synk): optionally mark these pipeline_mode=pl.Buffered(1) once
    # single-buffering of constant operands is verified on the target jax rev.
    const = lambda shape: pl.BlockSpec(shape, lambda i: (0, 0))

    out = pl.pallas_call(
        generator_kernel,
        out_shape=jax.ShapeDtypeStruct((b_p, out_size), jnp.float32),
        grid=grid,
        in_specs=[
            pl.BlockSpec((tb, in_size), lambda i: (i, 0)),   # x: tiled on batch
            const((in_size, hid_p)), const((1, hid_p)),      # fc1 (VMEM-resident)
            const((hid_p, hid_p)), const((1, hid_p)),        # fc2 (VMEM-resident)
            const((hid_p, out_size)), const((1, out_size)),  # fc3 (VMEM-resident)
        ],
        # Last dim == full array dim (out_size), so the (8,128) rule is satisfied
        # without lane padding -> no 8x output write amplification.
        out_specs=pl.BlockSpec((tb, out_size), lambda i: (i, 0)),
        compiler_params=pltpu.CompilerParams(
            dimension_semantics=("parallel",),          # megacore-splittable batch
            vmem_limit_bytes=32 * 1024 * 1024,          # explicit; safe on v7x too
        ),
    )(xp, w1p, b1p, w2p, b2p, w3p, b3p)

    # Strip batch padding only (no lane padding to strip anymore).
    return out if b_p == B else out[:B]


def init_params(key, input_size, hidden_size, output_size):
    """Deterministic PyTorch-style uniform init: U(-1/sqrt(fan_in), 1/sqrt(fan_in))."""
    def linear(key, fan_in, fan_out):
        kw, kb = jax.random.split(key)
        bound = 1.0 / (fan_in ** 0.5)
        w = jax.random.uniform(kw, (fan_in, fan_out), jnp.float32, -bound, bound)
        b = jax.random.uniform(kb, (1, fan_out), jnp.float32, -bound, bound)
        return w, b

    k1, k2, k3 = jax.random.split(key, 3)
    w1, b1 = linear(k1, input_size, hidden_size)
    w2, b2 = linear(k2, hidden_size, hidden_size)
    w3, b3 = linear(k3, hidden_size, output_size)
    # fc4 (hidden -> input_size) is defined in __init__ but unused in forward.
    return {"w1": w1, "b1": b1, "w2": w2, "b2": b2, "w3": w3, "b3": b3}


def reference_forward(x, p, compute_dtype=jnp.bfloat16):
    """Pure-JAX reference with the same numerics path (bf16 operands, f32 accum)."""
    def dense(h, w, b):
        return jnp.dot(h.astype(compute_dtype), w.astype(compute_dtype),
                       preferred_element_type=jnp.float32) + b
    h = jnp.maximum(dense(x, p["w1"], p["b1"]), 0.0)
    h = jnp.maximum(dense(h, p["w2"], p["b2"]), 0.0)
    h = jnp.maximum(dense(h, p["w2"], p["b2"]), 0.0)
    return jnp.tanh(dense(h, p["w3"], p["b3"]))


if __name__ == "__main__":
    input_size, hidden_size, output_size = 64, 32, 16
    batch = 8   # small smoke-test shape; kernel structure targets large batch

    key = jax.random.PRNGKey(0)
    kx, kp = jax.random.split(key)
    x = jax.random.normal(kx, (batch, input_size), jnp.float32)
    params = init_params(kp, input_size, hidden_size, output_size)

    out = generator_forward(x, params)
    out = jax.block_until_ready(out)

    ref = reference_forward(x, params)
    assert out.shape == (batch, output_size), out.shape
    assert jnp.allclose(out, ref, atol=5e-3, rtol=5e-3), (
        "mismatch vs JAX reference, max abs err = "
        f"{float(jnp.max(jnp.abs(out - ref)))}")

    print("KERNEL_OK")
</pallas_src>

<mosaic_0001>
module attributes {stable_mosaic.version = 11 : i64} {
  func.func @generator_kernel(%arg0: i32, %arg1: memref<8x64xbf16, #tpu.memory_space<vmem>>, %arg2: memref<64x128xbf16, #tpu.memory_space<vmem>>, %arg3: memref<1x128xf32, #tpu.memory_space<vmem>>, %arg4: memref<128x128xbf16, #tpu.memory_space<vmem>>, %arg5: memref<1x128xf32, #tpu.memory_space<vmem>>, %arg6: memref<128x16xbf16, #tpu.memory_space<vmem>>, %arg7: memref<1x16xf32, #tpu.memory_space<vmem>>, %arg8: memref<8x16xf32, #tpu.memory_space<vmem>>) attributes {dimension_semantics = [#tpu.dimension_semantics<parallel>], iteration_bounds = array<i64: 1>, scalar_prefetch = 0 : i64, scratch_operands = 0 : i64, tpu.core_type = #tpu.core_type<tc>, window_params = [{transform_indices = @transform_0, window_bounds = array<i64: 8, 64>}, {pipeline_mode = #tpu.pipeline_mode<synchronous>, transform_indices = @transform_1, window_bounds = array<i64: 64, 128>}, {pipeline_mode = #tpu.pipeline_mode<synchronous>, transform_indices = @transform_2, window_bounds = array<i64: 1, 128>}, {pipeline_mode = #tpu.pipeline_mode<synchronous>, transform_indices = @transform_3, window_bounds = array<i64: 128, 128>}, {pipeline_mode = #tpu.pipeline_mode<synchronous>, transform_indices = @transform_4, window_bounds = array<i64: 1, 128>}, {pipeline_mode = #tpu.pipeline_mode<synchronous>, transform_indices = @transform_5, window_bounds = array<i64: 128, 16>}, {pipeline_mode = #tpu.pipeline_mode<synchronous>, transform_indices = @transform_6, window_bounds = array<i64: 1, 16>}, {transform_indices = @transform_7, window_bounds = array<i64: 8, 16>}]} {
    %c0 = arith.constant 0 : index
    %c0_0 = arith.constant 0 : index
    %0 = vector.load %arg1[%c0, %c0_0] : memref<8x64xbf16, #tpu.memory_space<vmem>>, vector<8x64xbf16>
    %c0_1 = arith.constant 0 : index
    %c0_2 = arith.constant 0 : index
    %1 = vector.load %arg2[%c0_1, %c0_2] : memref<64x128xbf16, #tpu.memory_space<vmem>>, vector<64x128xbf16>
    %c0_3 = arith.constant 0 : index
    %c0_4 = arith.constant 0 : index
    %2 = vector.load %arg4[%c0_3, %c0_4] : memref<128x128xbf16, #tpu.memory_space<vmem>>, vector<128x128xbf16>
    %c0_5 = arith.constant 0 : index
    %c0_6 = arith.constant 0 : index
    %3 = vector.load %arg6[%c0_5, %c0_6] : memref<128x16xbf16, #tpu.memory_space<vmem>>, vector<128x16xbf16>
    %c0_7 = arith.constant 0 : index
    %c0_8 = arith.constant 0 : index
    %4 = vector.load %arg3[%c0_7, %c0_8] : memref<1x128xf32, #tpu.memory_space<vmem>>, vector<1x128xf32>
    %c0_9 = arith.constant 0 : index
    %c0_10 = arith.constant 0 : index
    %5 = vector.load %arg5[%c0_9, %c0_10] : memref<1x128xf32, #tpu.memory_space<vmem>>, vector<1x128xf32>
    %c0_11 = arith.constant 0 : index
    %c0_12 = arith.constant 0 : index
    %6 = vector.load %arg7[%c0_11, %c0_12] : memref<1x16xf32, #tpu.memory_space<vmem>>, vector<1x16xf32>
    %cst = arith.constant dense<0.000000e+00> : vector<8x128xf32>
    %7 = tpu.matmul %0, %1, %cst {dimension_numbers = #tpu.dot_dimension_numbers<[1], [0], [0], [1], [0, 0, 1, 1], [], []>} : vector<8x64xbf16>, vector<64x128xbf16>, vector<8x128xf32> -> vector<8x128xf32>
    %8 = vector.broadcast %4 : vector<1x128xf32> to vector<8x128xf32>
    %9 = arith.addf %7, %8 : vector<8x128xf32>
    %cst_13 = arith.constant 0.000000e+00 : f32
    %10 = vector.broadcast %cst_13 : f32 to vector<8x128xf32>
    %11 = arith.maximumf %9, %10 : vector<8x128xf32>
    %12 = arith.truncf %11 : vector<8x128xf32> to vector<8x128xbf16>
    %cst_14 = arith.constant dense<0.000000e+00> : vector<8x128xf32>
    %13 = tpu.matmul %12, %2, %cst_14 {dimension_numbers = #tpu.dot_dimension_numbers<[1], [0], [0], [1], [0, 0, 1, 1], [], []>} : vector<8x128xbf16>, vector<128x128xbf16>, vector<8x128xf32> -> vector<8x128xf32>
    %14 = vector.broadcast %5 : vector<1x128xf32> to vector<8x128xf32>
    %15 = arith.addf %13, %14 : vector<8x128xf32>
    %cst_15 = arith.constant 0.000000e+00 : f32
    %16 = vector.broadcast %cst_15 : f32 to vector<8x128xf32>
    %17 = arith.maximumf %15, %16 : vector<8x128xf32>
    %18 = arith.truncf %17 : vector<8x128xf32> to vector<8x128xbf16>
    %cst_16 = arith.constant dense<0.000000e+00> : vector<8x128xf32>
    %19 = tpu.matmul %18, %2, %cst_16 {dimension_numbers = #tpu.dot_dimension_numbers<[1], [0], [0], [1], [0, 0, 1, 1], [], []>} : vector<8x128xbf16>, vector<128x128xbf16>, vector<8x128xf32> -> vector<8x128xf32>
    %20 = vector.broadcast %5 : vector<1x128xf32> to vector<8x128xf32>
    %21 = arith.addf %19, %20 : vector<8x128xf32>
    %cst_17 = arith.constant 0.000000e+00 : f32
    %22 = vector.broadcast %cst_17 : f32 to vector<8x128xf32>
    %23 = arith.maximumf %21, %22 : vector<8x128xf32>
    %24 = arith.truncf %23 : vector<8x128xf32> to vector<8x128xbf16>
    %cst_18 = arith.constant dense<0.000000e+00> : vector<8x16xf32>
    %25 = tpu.matmul %24, %3, %cst_18 {dimension_numbers = #tpu.dot_dimension_numbers<[1], [0], [0], [1], [0, 0, 1, 1], [], []>} : vector<8x128xbf16>, vector<128x16xbf16>, vector<8x16xf32> -> vector<8x16xf32>
    %26 = vector.broadcast %6 : vector<1x16xf32> to vector<8x16xf32>
    %27 = arith.addf %25, %26 : vector<8x16xf32>
    %28 = math.tanh %27 : vector<8x16xf32>
    %c0_19 = arith.constant 0 : index
    %c0_20 = arith.constant 0 : index
    %29 = vector.load %arg8[%c0_19, %c0_20] : memref<8x16xf32, #tpu.memory_space<vmem>>, vector<8x16xf32>
    tpu.vector_store %arg8[%c0_19, %c0_20], %28 {strides = array<i32>} : memref<8x16xf32, #tpu.memory_space<vmem>>, vector<8x16xf32>,
    return
  }
  func.func @transform_0(%arg0: i32) -> (i32, i32) {
    %c0_i32 = arith.constant 0 : i32
    %c0_i32_0 = arith.constant 0 : i32
    return %arg0, %c0_i32 : i32, i32
  }
  func.func @transform_1(%arg0: i32) -> (i32, i32) {
    %c0_i32 = arith.constant 0 : i32
    %c0_i32_0 = arith.constant 0 : i32
    %c0_i32_1 = arith.constant 0 : i32
    return %c0_i32, %c0_i32_0 : i32, i32
  }
  func.func @transform_2(%arg0: i32) -> (i32, i32) {
    %c0_i32 = arith.constant 0 : i32
    %c0_i32_0 = arith.constant 0 : i32
    %c0_i32_1 = arith.constant 0 : i32
    return %c0_i32, %c0_i32_0 : i32, i32
  }
  func.func @transform_3(%arg0: i32) -> (i32, i32) {
    %c0_i32 = arith.constant 0 : i32
    %c0_i32_0 = arith.constant 0 : i32
    %c0_i32_1 = arith.constant 0 : i32
    return %c0_i32, %c0_i32_0 : i32, i32
  }
  func.func @transform_4(%arg0: i32) -> (i32, i32) {
    %c0_i32 = arith.constant 0 : i32
    %c0_i32_0 = arith.constant 0 : i32
    %c0_i32_1 = arith.constant 0 : i32
    return %c0_i32, %c0_i32_0 : i32, i32
  }
  func.func @transform_5(%arg0: i32) -> (i32, i32) {
    %c0_i32 = arith.constant 0 : i32
    %c0_i32_0 = arith.constant 0 : i32
    %c0_i32_1 = arith.constant 0 : i32
    return %c0_i32, %c0_i32_0 : i32, i32
  }
  func.func @transform_6(%arg0: i32) -> (i32, i32) {
    %c0_i32 = arith.constant 0 : i32
    %c0_i32_0 = arith.constant 0 : i32
    %c0_i32_1 = arith.constant 0 : i32
    return %c0_i32, %c0_i32_0 : i32, i32
  }
  func.func @transform_7(%arg0: i32) -> (i32, i32) {
    %c0_i32 = arith.constant 0 : i32
    %c0_i32_0 = arith.constant 0 : i32
    return %arg0, %c0_i32 : i32, i32
  }
}

</mosaic_0001>

<bundles_post_ra>
// kernel: tpu_custom_call.1
= control target key start
LH: loop header
LB: loop body
LE: loop exit
PB: predicated region body
PF: predicated region fallthrough
CT: control target
= control target key end

     0   :  { %12 = vsyncpa [#allocation3], 0  ;;  %s571_s0 = inlined_call_operand.vmem [shape: bf16[8,64], index: 0, kind: input, shape index: {}]   ;;  %s572_s1 = inlined_call_operand.hbm [shape: bf16[64,128], index: 1, kind: input, shape index: {}]   ;;  %s573_s2 = inlined_call_operand.vmem [shape: f32[1,128], index: 2, kind: input, shape index: {}]   ;;  %s574_s3 = inlined_call_operand.vmem [shape: bf16[128,128], index: 3, kind: input, shape index: {}]   ;;  %s575_s4 = inlined_call_operand.vmem [shape: f32[1,128], index: 4, kind: input, shape index: {}]   ;;  %s576_s5 = inlined_call_operand.vmem [shape: bf16[128,16], index: 5, kind: input, shape index: {}]   ;;  %s577_s6 = inlined_call_operand.vmem [shape: f32[1,16], index: 6, kind: input, shape index: {}]   ;;  %s578_s7 = inlined_call_operand.hbm [shape: f32[8,16], index: 7, kind: output, shape index: {}]  }
   0x1   :  { %13 = vsyncpa [#allocation4], 0  ;;  %s20_s26 = sshll.u32 %s572_s1, 4  ;;  %s461_s27 = smov [#allocation2]   ;;  %s21_s26 = int_to_ptr.hbm [resolvable:$true] %s20_s26 }
   0x2   :  { %s22_s28 = sshll.u32 %s461_s27, 4  ;;  %s462_s29 = smov 64   ;;  %s23_s28 = int_to_ptr.vmem [resolvable:$true] %s22_s28 }
   0x3   :  { %s463_s30 = smov 4  }
   0x4   :  { %28 = dma.hbm_to_vmem [thread:$0]  %s21_s26, 512, %s23_s28, [#allocation3], %s462_s29, %s462_s29, %s463_s30  }
   0x5   :  { %457 = dma.done.wait [#allocation3], 512  }
   0x6   :  { %458 = vsyncadd [#allocation3], 4294966784  ;;  %v383_v0 = vld [vmem:[#allocation2 + $0x18] sm:$0xff]  ;;  %v382_v2 = vld [vmem:[#allocation2 + $0x10] sm:$0xff]  ;;  %vm115_vm0 = vcmask 523264   ;;  %s464_s19 = smov [#allocation5]  }
   0x7   :  { %v391_v1 = vld [vmem:[%s574_s3 + $0x38] sm:$0xff]  ;;  %123 = vmatpush.bf16.msra.mxu0 %v383_v0  ;;  %v390_v3 = vld [vmem:[%s574_s3 + $0x30] sm:$0xff]  ;;  %v381_v4 = vld [vmem:[#allocation2 + $0x8] sm:$0xff]  ;;  %s287_s20 = sshll.u32 %s464_s19, 4  ;;  %vm280_vm1 = vcmask 130048   ;;  %s288_s20 = int_to_ptr.vmem [resolvable:$true] %s287_s20 }
   0x8   :  { %185 = vmatpush.bf16.msra.mxu1 %v391_v1  ;;  %200 = vmatpush.bf16.msra.mxu2 %v391_v1  ;;  %v389_v5 = vld [vmem:[%s574_s3 + $0x28] sm:$0xff]  ;;  %v380_v6 = vld [vmem:[#allocation2] sm:$0xff]  ;;  %v387_v9 = vld [vmem:[%s574_s3 + $0x18] sm:$0xff] }
   0x9   :  { %v388_v7 = vld [vmem:[%s574_s3 + $0x20] sm:$0xff]  ;;  %v386_v10 = vld [vmem:[%s574_s3 + $0x10] sm:$0xff]  ;;  %v385_v11 = vld [vmem:[%s574_s3 + $0x8] sm:$0xff] }
   0xa   :  { %v44_v8 = vld [vmem:[%s571_s0] sm:$0xf]  ;;  %v399_v19 = vld [vmem:[%s576_s5 + $0x38] sm:$0xff]  ;;  %v398_v20 = vld [vmem:[%s576_s5 + $0x30] sm:$0xff] }
   0xb   :  { %124 = vmatpush.bf16.msra.mxu0 %v382_v2  ;;  %v384_v12 = vld [vmem:[%s574_s3] sm:$0xff]  ;;  %266 = vmatpush.bf16.msra.mxu3 %v399_v19  ;;  %v397_v21 = vld [vmem:[%s576_s5 + $0x28] sm:$0xff]  ;;  %v395_v23 = vld [vmem:[%s576_s5 + $0x18] sm:$0xff] }
   0xc   :  { %186 = vmatpush.bf16.msra.mxu1 %v390_v3  ;;  %201 = vmatpush.bf16.msra.mxu2 %v390_v3  ;;  %v404_v13 = vld [vmem:[%s573_s2] ss:$0 sm:$0xff]  ;;  %v394_v24 = vld [vmem:[%s576_s5 + $0x10] sm:$0xff]  ;;  %v393_v31 = vld [vmem:[%s576_s5 + $0x8] sm:$0xff] }
   0xd   :  { %v396_v22 = vld [vmem:[%s576_s5 + $0x20] sm:$0xff] }
   0xe   :  { %v405_v25 = vld [vmem:[%s575_s4] ss:$0 sm:$0xff] }
   0xf   :  { %125 = vmatpush.bf16.msra.mxu0 %v381_v4  ;;  %267 = vmatpush.bf16.msra.mxu3 %v398_v20  ;;  %v392_v32 = vld [vmem:[%s576_s5] sm:$0xff]  ;;  %s289_s5 = sshll.u32 %s578_s7, 4  ;;  %s290_s5 = int_to_ptr.hbm [resolvable:$true] %s289_s5 }
  0x10   :  { %187 = vmatpush.bf16.msra.mxu1 %v389_v5  ;;  %202 = vmatpush.bf16.msra.mxu2 %v389_v5  ;;  %v406_v38 = vld [vmem:[%s577_s6] ss:$0 sm:$0xff] }
  0x13   :  { %126 = vmatpush.bf16.msra.mxu0 %v380_v6  ;;  %268 = vmatpush.bf16.msra.mxu3 %v397_v21 }
  0x14   :  { %188 = vmatpush.bf16.msra.mxu1 %v388_v7  ;;  %203 = vmatpush.bf16.msra.mxu2 %v388_v7 }
  0x16   :  { %315 = vmatmul.msk.bf16.vlgmr.msra.gmra.mxu0 %vm115_vm0, %v44_v8 }
  0x17   :  { %269 = vmatpush.bf16.msra.mxu3 %v396_v22 }
  0x18   :  { %189 = vmatpush.bf16.msra.mxu1 %v387_v9  ;;  %204 = vmatpush.bf16.msra.mxu2 %v387_v9 }
  0x1b   :  { %270 = vmatpush.bf16.msra.mxu3 %v395_v23 }
  0x1c   :  { %190 = vmatpush.bf16.msra.mxu1 %v386_v10  ;;  %205 = vmatpush.bf16.msra.mxu2 %v386_v10 }
  0x1f   :  { %271 = vmatpush.bf16.msra.mxu3 %v394_v24 }
  0x20   :  { %191 = vmatpush.bf16.msra.mxu1 %v385_v11  ;;  %206 = vmatpush.bf16.msra.mxu2 %v385_v11 }
  0x23   :  { %272 = vmatpush.bf16.msra.mxu3 %v393_v31 }
  0x24   :  { %192 = vmatpush.bf16.msra.mxu1 %v384_v12  ;;  %207 = vmatpush.bf16.msra.mxu2 %v384_v12 }
  0x27   :  { %273 = vmatpush.bf16.msra.mxu3 %v392_v32 }
  0x93   :  { %v128_v14 = vpop.f32.mrf.mxu0 }
  0x94   :  { %v129_v15 = vadd.f32 %v404_v13, %v128_v14 }
  0x96   :  { %v132_v16 = vmax.f32 %v129_v15, 0.0 }
  0x98   :  { %v133_v17 = vpack.c.bf16 %v132_v16, %v132_v16 }
  0x9a   :  { %193 = vmatmul.bf16.vlgmr.msra.gmra.mxu1 %v133_v17 }
  0x9b   :  { %v130_v18 = vpop.f32.mrf.mxu0 }
 0x117   :  { %v194_v26 = vpop.f32.mrf.mxu1 }
 0x118   :  { %v195_v27 = vadd.f32 %v405_v25, %v194_v26 }
 0x11a   :  { %v198_v28 = vmax.f32 %v195_v27, 0.0 }
 0x11c   :  { %v199_v29 = vpack.c.bf16 %v198_v28, %v198_v28 }
 0x11e   :  { %208 = vmatmul.bf16.vlgmr.msra.gmra.mxu2 %v199_v29 }
 0x11f   :  { %v196_v30 = vpop.f32.mrf.mxu1 }
 0x1a1   :  { %v209_v33 = vpop.f32.mrf.mxu2 }
 0x1a2   :  { %v210_v34 = vadd.f32 %v405_v25, %v209_v33 }
 0x1a4   :  { %v213_v35 = vmax.f32 %v210_v34, 0.0 }
 0x1a6   :  { %v214_v36 = vpack.c.bf16 %v213_v35, %v213_v35 }
 0x1a8   :  { %274 = vmatmul.bf16.vlgmr.msra.gmra.mxu3 %v214_v36 }
 0x1a9   :  { %v211_v37 = vpop.f32.mrf.mxu2 }
 0x22b   :  { %v275_v39 = vpop.f32.mrf.mxu3 }
 0x22c   :  { %v276_v40 = vadd.f32 %v406_v38, %v275_v39 }
 0x22e   :  { %407 = vtanh.f32 %v276_v40 }
 0x233   :  { %v277_v41 = vpop.f32.mrf.mxu3 }
 0x234   :  { %v408_v42 = vpop.eup %407 }
 0x235   :  { %281 = vst.msk [vmem:[#allocation5] sm:$0xff] %vm280_vm1, %v408_v42 }
 0x236   :  { %292 = dma.vmem_to_hbm [thread:$0]  %s288_s20, 128, %s290_s5, [#allocation4]  }
 0x237   :  { %459 = dma.done.wait [#allocation4], 128  }
 0x238   :  { %460 = vsyncadd [#allocation4], 4294967168 }
 0x239   :  { %297 = vsyncpa [#allocation3], 1 }
 0x23a   :  { %298 = vsyncpa [#allocation4], 1 }

</bundles_post_ra>
